<compile_context>
chip_gen: v7x
topology: tpu7x:2x2x1
jax: 0.10.0
libtpu: 0.0.40
codegen_flags: <defaults>
</compile_context>

<pallas_src>
import functools

import jax
import jax.numpy as jnp
from jax import lax
from jax.experimental import pallas as pl
from jax.experimental.pallas import tpu as pltpu


_SMALL_TOTAL_BYTES = 2 << 20   # combined-input bytes for the single-block path
_MAX_TILE_D = 4096             # cap on the D tile in the (rare) 2-D-grid path


def _round_up(v, m):
    return ((v + m - 1) // m) * m


def _vmem_budget():
    """(capacity, usable budget) in bytes; generation-aware with safe fallback."""
    cap = 64 << 20  # conservative default if the query is unavailable
    try:
        info = pltpu.get_tpu_info()
        cap = int(getattr(info, "vmem_capacity_bytes", cap)) or cap
    except Exception:
        pass
    budget = max(cap - (12 << 20), 16 << 20)
    return cap, budget


# ---------------------------------------------------------------------------
# Small path: whole problem in a single invocation (full-array blocks).
# ---------------------------------------------------------------------------
def _small_kernel(x_ref, l_ref, o_ref):
    total = jnp.sum(x_ref[...].astype(jnp.float32) * l_ref[...].astype(jnp.float32))
    o_ref[...] = jnp.full((1, 1), total, jnp.float32)


def _sum_small(x, lab):
    R, W = x.shape
    out = pl.pallas_call(
        _small_kernel,
        out_shape=jax.ShapeDtypeStruct((1, 1), jnp.float32),
        grid_spec=pltpu.PrefetchScalarGridSpec(
            num_scalar_prefetch=0,
            grid=(1,),
            in_specs=[pl.BlockSpec((R, W), lambda i: (0, 0)),
                      pl.BlockSpec((R, W), lambda i: (0, 0))],
            out_specs=pl.BlockSpec((1, 1), lambda i: (0, 0)),
        ),
    )(x, lab)
    return out[0, 0]


# ---------------------------------------------------------------------------
# Full-row path (nd == 1): 1-D "parallel" grid over row tiles, no scratch.
# ---------------------------------------------------------------------------
def _rows_kernel(x_ref, l_ref, o_ref, *, valid_rows, tile_b, mask_rows):
    prod = x_ref[...].astype(jnp.float32) * l_ref[...].astype(jnp.float32)
    if mask_rows:
        # Only the ragged last row tile has garbage rows; (tile_b, 1) mask
        # broadcasts along lanes.
        rows = (lax.broadcasted_iota(jnp.int32, (tile_b, 1), 0)
                + pl.program_id(0) * tile_b)
        prod = jnp.where(rows < valid_rows, prod, 0.0)
    o_ref[...] = jnp.full((1, 1, 1), jnp.sum(prod), jnp.float32)


def _sum_rows(x, lab, tile_b, vmem_limit):
    R, W = x.shape
    nb = pl.cdiv(R, tile_b)
    kernel = functools.partial(
        _rows_kernel, valid_rows=R, tile_b=tile_b, mask_rows=(R % tile_b) != 0)
    return pl.pallas_call(
        kernel,
        out_shape=jax.ShapeDtypeStruct((nb, 1, 1), jnp.float32),
        grid_spec=pltpu.PrefetchScalarGridSpec(
            num_scalar_prefetch=0,
            grid=(nb,),
            in_specs=[pl.BlockSpec((tile_b, W), lambda i: (i, 0)),
                      pl.BlockSpec((tile_b, W), lambda i: (i, 0))],
            out_specs=pl.BlockSpec((1, 1, 1), lambda i: (i, 0, 0)),
        ),
        compiler_params=pltpu.CompilerParams(
            dimension_semantics=("parallel",),
            vmem_limit_bytes=int(vmem_limit),
        ),
    )(x, lab)


# ---------------------------------------------------------------------------
# 2-D grid path (nd > 1): small (tile_b, 128) accumulator, masking hoisted.
# ---------------------------------------------------------------------------
def _tiled_kernel(x_ref, l_ref, o_ref, acc_ref, *, valid_rows, valid_cols,
                  tile_b, tile_d, mask_rows, mask_cols):
    bi = pl.program_id(0)
    dj = pl.program_id(1)
    nd = pl.num_programs(1)

    prod = x_ref[...].astype(jnp.float32) * l_ref[...].astype(jnp.float32)

    def fold(p):
        # Fold 128-lane groups into a (tile_b, 128) partial using static,
        # 128-aligned slices (no relayout). Accumulator load/store traffic is
        # ~tile_d/128x lower than a full-tile accumulator.
        acc = p[:, 0:128]
        for g in range(1, tile_d // 128):
            acc = acc + p[:, g * 128:(g + 1) * 128]
        return acc

    @pl.when(dj == 0)
    def _():
        acc_ref[...] = fold(prod)               # write, not zero-fill + add

    @pl.when(jnp.logical_and(dj > 0, dj < nd - 1))
    def _():
        acc_ref[...] += fold(prod)              # mask-free steady state

    @pl.when(dj == nd - 1)
    def _():
        p = prod
        if mask_cols:
            # Column padding only ever exists on the last D tile.
            cols = (lax.broadcasted_iota(jnp.int32, (1, tile_d), 1)
                    + dj * tile_d)
            p = jnp.where(cols < valid_cols, p, 0.0)
        acc = acc_ref[...] + fold(p)
        if mask_rows:
            # Row padding handled once per B tile, in the epilogue.
            rows = (lax.broadcasted_iota(jnp.int32, (tile_b, 1), 0)
                    + bi * tile_b)
            acc = jnp.where(rows < valid_rows, acc, 0.0)
        o_ref[...] = jnp.full((1, 1, 1), jnp.sum(acc), jnp.float32)


def _sum_tiled2d(x, lab, tile_b, tile_d, vmem_limit):
    R, W = x.shape
    nb = pl.cdiv(R, tile_b)
    nd = pl.cdiv(W, tile_d)
    assert nd >= 2 and tile_d % 128 == 0
    kernel = functools.partial(
        _tiled_kernel, valid_rows=R, valid_cols=W, tile_b=tile_b, tile_d=tile_d,
        mask_rows=(R % tile_b) != 0, mask_cols=(W % tile_d) != 0)
    return pl.pallas_call(
        kernel,
        out_shape=jax.ShapeDtypeStruct((nb, 1, 1), jnp.float32),
        grid_spec=pltpu.PrefetchScalarGridSpec(
            num_scalar_prefetch=0,
            grid=(nb, nd),                       # reduction axis (D tiles) last
            in_specs=[pl.BlockSpec((tile_b, tile_d), lambda i, j: (i, j)),
                      pl.BlockSpec((tile_b, tile_d), lambda i, j: (i, j))],
            out_specs=pl.BlockSpec((1, 1, 1), lambda i, j: (i, 0, 0)),
            scratch_shapes=[pltpu.VMEM((tile_b, 128), jnp.float32)],
        ),
        compiler_params=pltpu.CompilerParams(
            dimension_semantics=("parallel", "arbitrary"),
            vmem_limit_bytes=int(vmem_limit),
        ),
    )(x, lab)


# ---------------------------------------------------------------------------
# Tile selection & dispatch.
# ---------------------------------------------------------------------------
def _select_tiles(R, W, max_item, bpe):
    """Pick (tile_b, tile_d, nd, vmem_limit) for an (R, W) multiply-reduce."""
    cap, budget = _vmem_budget()
    # Per-input block target; bigger blocks amortize the ~0.35us/step overhead.
    target_in_bytes = (16 << 20) if cap >= (96 << 20) else (6 << 20)
    target_elems = max(8 * 128, target_in_bytes // max_item)

    # tile_d: prefer full rows (contiguous HBM DMA, no scratch, no col masks).
    if W <= 128 or 8 * W <= target_elems:
        tile_d = W
    else:
        tile_d = min(_MAX_TILE_D,
                     max(128, ((target_elems // 8) // 128) * 128),
                     (W // 128) * 128)
        if tile_d >= W:
            tile_d = W
    nd = pl.cdiv(W, tile_d)

    # tile_b: fill the per-input block target ...
    tile_b = min(R, max(8, ((target_elems // tile_d) // 8) * 8))

    # ... but keep >= 2 (preferably an even number of) row tiles so the
    # "parallel" axis feeds both v7x TensorCores with balanced work.
    if R >= 16:
        nb = pl.cdiv(R, tile_b)
        if nb == 1 or (nb % 2 == 1 and nb <= 8):
            nb_want = 2 if nb == 1 else nb + 1
            tile_b = min(R, max(8, _round_up(pl.cdiv(R, nb_want), 8)))

    # Double-buffered input blocks + small f32 accumulator must fit the usable
    # VMEM of this generation; shrink tile_b instead of under-provisioning.
    def vmem_need(tb):
        block = tb * tile_d * bpe
        acc = tb * 128 * 4 if nd > 1 else 0
        return 2 * block + acc + (2 << 20)

    while vmem_need(tile_b) > budget and tile_b > 8:
        tile_b = max(8, ((tile_b // 2) // 8) * 8)

    vmem_limit = min(budget, max(vmem_need(tile_b), 24 << 20))
    return tile_b, tile_d, nd, vmem_limit


def _masked_total(x, lab):
    """sum(x * lab) over all elements as a 0-d float32, via Pallas."""
    B, D = x.shape
    bpe = x.dtype.itemsize + lab.dtype.itemsize
    max_item = max(x.dtype.itemsize, lab.dtype.itemsize)

    if B * D * bpe <= _SMALL_TOTAL_BYTES:
        return _sum_small(x, lab)

    # Lane-dense relayout: shapes like D=201 pad every block's lane dim; a
    # contiguous (B*D/128, 128) view is free and always 128-lane dense.
    if D % 128 != 0 and (B * D) % 128 == 0:
        R, W = (B * D) // 128, 128
        x2, lab2 = x.reshape(R, W), lab.reshape(R, W)
    else:
        R, W = B, D
        x2, lab2 = x, lab

    tile_b, tile_d, nd, vmem_limit = _select_tiles(R, W, max_item, bpe)
    if nd == 1:
        partials = _sum_rows(x2, lab2, tile_b, vmem_limit)
    else:
        partials = _sum_tiled2d(x2, lab2, tile_b, tile_d, vmem_limit)
    return jnp.sum(partials)


def cross_entropy_of_gaussian(feature_vec_diff_norm_sqr, labels):
    """Pallas implementation of CrossEntropyOfGaussian.forward.

    loss = -sum(labels * (-x)) / B = sum(labels * x) / B   (scalar float32).
    Inputs may be f32 or bf16 (consumed in their own dtype; f32 accumulation).
    """
    x = jnp.asarray(feature_vec_diff_norm_sqr)
    lab = jnp.asarray(labels)
    assert x.ndim == 2 and x.shape == lab.shape
    B = x.shape[0]
    # TODO(synk): if labels are known one-hot, accept the index vector instead
    # of a dense (B, D) array (scalar prefetch + gather) to halve HBM traffic.
    return _masked_total(x, lab) / jnp.float32(B)


# ---------------------------------------------------------------------------
# Reference & self-test.
# ---------------------------------------------------------------------------
def _reference(x, labels):
    x = jnp.asarray(x, jnp.float32)
    labels = jnp.asarray(labels, jnp.float32)
    log_pred = -x
    return -1.0 * jnp.sum(labels * log_pred) / x.shape[0]


if __name__ == "__main__":
    keys = jax.random.split(jax.random.PRNGKey(0), 8)

    # 1) Module's natural small shape: B mini-batch pixels, D=201 disparities.
    B, D = 8, 201
    x = jax.random.uniform(keys[0], (B, D), jnp.float32, 0.0, 4.0)
    labels = jax.nn.one_hot(jax.random.randint(keys[1], (B,), 0, D), D,
                            dtype=jnp.float32)
    loss = jax.block_until_ready(cross_entropy_of_gaussian(x, labels))
    ref = _reference(x, labels)
    assert jnp.allclose(loss, ref, rtol=1e-5, atol=1e-5), (loss, ref)

    # 2) Full-row tiled path (nd == 1) with a ragged last row tile.
    B2, D2 = 300, 201
    x2 = jax.random.uniform(keys[2], (B2, D2), jnp.float32, 0.0, 4.0)
    l2 = jax.random.uniform(keys[3], (B2, D2), jnp.float32, 0.0, 1.0)
    got2 = jnp.sum(_sum_rows(x2, l2, tile_b=64, vmem_limit=32 << 20)) / B2
    ref2 = _reference(x2, l2)
    assert jnp.allclose(got2, ref2, rtol=1e-4, atol=1e-4), (got2, ref2)

    # 3) 2-D grid path (nd > 1) with ragged rows AND ragged columns.
    B3, D3 = 200, 520
    x3 = jax.random.uniform(keys[4], (B3, D3), jnp.float32, 0.0, 4.0)
    l3 = jax.random.uniform(keys[5], (B3, D3), jnp.float32, 0.0, 1.0)
    got3 = jnp.sum(_sum_tiled2d(x3, l3, tile_b=64, tile_d=256,
                                vmem_limit=32 << 20)) / B3
    ref3 = _reference(x3, l3)
    assert jnp.allclose(got3, ref3, rtol=1e-4, atol=1e-4), (got3, ref3)

    # 4) Auto path end-to-end: bf16 inputs, D not 128-dense -> flattened view.
    B4, D4 = 4096, 192
    x4 = jax.random.uniform(keys[6], (B4, D4), jnp.float32, 0.0, 4.0).astype(jnp.bfloat16)
    l4 = jax.random.uniform(keys[7], (B4, D4), jnp.float32, 0.0, 1.0).astype(jnp.bfloat16)
    got4 = jax.block_until_ready(cross_entropy_of_gaussian(x4, l4))
    ref4 = _reference(x4, l4)
    assert jnp.allclose(got4, ref4, rtol=1e-3, atol=1e-2), (got4, ref4)

    print("KERNEL_OK")
</pallas_src>

<mosaic_0001>
module attributes {stable_mosaic.version = 11 : i64} {
  func.func @_small_kernel(%arg0: i32, %arg1: memref<8x201xf32, #tpu.memory_space<vmem>>, %arg2: memref<8x201xf32, #tpu.memory_space<vmem>>, %arg3: memref<1x1xf32, #tpu.memory_space<vmem>>) attributes {dimension_semantics = [#tpu.dimension_semantics<arbitrary>], iteration_bounds = array<i64: 1>, scalar_prefetch = 0 : i64, scratch_operands = 0 : i64, tpu.core_type = #tpu.core_type<tc>, window_params = [{pipeline_mode = #tpu.pipeline_mode<synchronous>, transform_indices = @transform_0, window_bounds = array<i64: 8, 201>}, {pipeline_mode = #tpu.pipeline_mode<synchronous>, transform_indices = @transform_1, window_bounds = array<i64: 8, 201>}, {pipeline_mode = #tpu.pipeline_mode<synchronous>, transform_indices = @transform_2, window_bounds = array<i64: 1, 1>}]} {
    %c0 = arith.constant 0 : index
    %c0_0 = arith.constant 0 : index
    %0 = vector.load %arg1[%c0, %c0_0] : memref<8x201xf32, #tpu.memory_space<vmem>>, vector<8x201xf32>
    %c0_1 = arith.constant 0 : index
    %c0_2 = arith.constant 0 : index
    %1 = vector.load %arg2[%c0_1, %c0_2] : memref<8x201xf32, #tpu.memory_space<vmem>>, vector<8x201xf32>
    %2 = arith.mulf %0, %1 : vector<8x201xf32>
    %3 = vector.shape_cast %2 : vector<8x201xf32> to vector<1x8x201xf32>
    %cst = arith.constant dense<0.000000e+00> : vector<1xf32>
    %4 = vector.multi_reduction <add>, %3, %cst [1, 2] : vector<1x8x201xf32> to vector<1xf32>
    %5 = vector.shape_cast %4 : vector<1xf32> to vector<1x1x1xf32>
    %6 = vector.extract %5[0, 0, 0] : f32 from vector<1x1x1xf32>
    %7 = vector.broadcast %6 : f32 to vector<1x1xf32>
    %c0_3 = arith.constant 0 : index
    %c0_4 = arith.constant 0 : index
    %8 = vector.load %arg3[%c0_3, %c0_4] : memref<1x1xf32, #tpu.memory_space<vmem>>, vector<1x1xf32>
    tpu.vector_store %arg3[%c0_3, %c0_4], %7 {strides = array<i32>} : memref<1x1xf32, #tpu.memory_space<vmem>>, vector<1x1xf32>,
    return
  }
  func.func @transform_0(%arg0: i32) -> (i32, i32) {
    %c0_i32 = arith.constant 0 : i32
    %c0_i32_0 = arith.constant 0 : i32
    %c0_i32_1 = arith.constant 0 : i32
    return %c0_i32, %c0_i32_0 : i32, i32
  }
  func.func @transform_1(%arg0: i32) -> (i32, i32) {
    %c0_i32 = arith.constant 0 : i32
    %c0_i32_0 = arith.constant 0 : i32
    %c0_i32_1 = arith.constant 0 : i32
    return %c0_i32, %c0_i32_0 : i32, i32
  }
  func.func @transform_2(%arg0: i32) -> (i32, i32) {
    %c0_i32 = arith.constant 0 : i32
    %c0_i32_0 = arith.constant 0 : i32
    %c0_i32_1 = arith.constant 0 : i32
    return %c0_i32, %c0_i32_0 : i32, i32
  }
}

</mosaic_0001>

<bundles_post_ra>
// kernel: tpu_custom_call.1
= control target key start
LH: loop header
LB: loop body
LE: loop exit
PB: predicated region body
PF: predicated region fallthrough
CT: control target
= control target key end

     0   :  { %7 = vsyncpa [#allocation3], 0  ;;  %s204_s0 = inlined_call_operand.hbm [shape: f32[8,201], index: 0, kind: input, shape index: {}]   ;;  %s205_s1 = inlined_call_operand.hbm [shape: f32[8,201], index: 1, kind: input, shape index: {}]   ;;  %s206_s2 = inlined_call_operand.hbm [shape: f32[1,1], index: 2, kind: output, shape index: {}]  }
   0x1   :  { %8 = vsyncpa [#allocation6], 0 }
   0x2   :  { %9 = vsyncpa [#allocation4], 0  ;;  %s150_s9 = smov [#allocation2]   ;;  %s151_s11 = smov [#allocation5]  }
   0x3   :  { %s16_s10 = sshll.u32 %s150_s9, 4  ;;  %s26_s12 = sshll.u32 %s151_s11, 4  ;;  %s17_s10 = int_to_ptr.vmem [resolvable:$true] %s16_s10  ;;  %s27_s12 = int_to_ptr.vmem [resolvable:$true] %s26_s12 }
   0x4   :  { %s78_s15 = scalar_lea.hbm %s204_s0, 256 }
   0x5   :  { %p79_p0 = scmp.ne.s32.totalorder %s204_s0, %s78_s15  ;;  %p82_p1 = scmp.lt.u32.totalorder %s78_s15, %s204_s0 }
   0x7   :  { %p84_p2 = pnand %p82_p1, %p79_p0 }
   0x9   :  { %87 = shalt.err (!%p84_p2)
}
   0xa   :  { %s88_s20 = scalar_lea.vmem %s17_s10, 256  ;;  %p93_p4 = scmp.lt.s32.totalorder %s17_s10, %s17_s10 }
   0xb   :  { %p89_p3 = scmp.ne.s32.totalorder %s17_s10, %s88_s20  ;;  %p94_p5 = scmp.lt.s32.totalorder %s88_s20, %s88_s20 }
   0xd   :  { %p95_p6 = por %p94_p5, %p93_p4 }
   0xf   :  { %p96_p7 = pnand %p95_p6, %p89_p3 }
  0x11   :  { %99 = shalt.err (!%p96_p7)
}
  0x12   :  { %19 = dma.hbm_to_vmem [thread:$0]  %s204_s0, 256, %s17_s10, [#allocation3]  }
  0x13   :  { %s100_s25 = scalar_lea.hbm %s205_s1, 256 }
  0x14   :  { %p101_p8 = scmp.ne.s32.totalorder %s205_s1, %s100_s25  ;;  %p104_p9 = scmp.lt.u32.totalorder %s100_s25, %s205_s1 }
  0x16   :  { %p106_p10 = pnand %p104_p9, %p101_p8 }
  0x18   :  { %109 = shalt.err (!%p106_p10)
}
  0x19   :  { %s110_s30 = scalar_lea.vmem %s27_s12, 256  ;;  %p115_p12 = scmp.lt.s32.totalorder %s27_s12, %s27_s12 }
  0x1a   :  { %p111_p11 = scmp.ne.s32.totalorder %s27_s12, %s110_s30  ;;  %p116_p13 = scmp.lt.s32.totalorder %s110_s30, %s110_s30 }
  0x1c   :  { %p117_p0 = por %p116_p13, %p115_p12 }
  0x1e   :  { %p118_p1 = pnand %p117_p0, %p111_p11 }
  0x20   :  { %121 = shalt.err (!%p118_p1)
}
  0x21   :  { %29 = dma.hbm_to_vmem [thread:$0]  %s205_s1, 256, %s27_s12, [#allocation6]  }
  0x22   :  { %144 = dma.done.wait [#allocation3], 256  }
  0x23   :  { %145 = vsyncadd [#allocation3], 4294967040 }
  0x24   :  { %146 = dma.done.wait [#allocation6], 256  }
  0x25   :  { %147 = vsyncadd [#allocation6], 4294967040  ;;  %v36_v0 = vld [vmem:[#allocation2] sm:$0xff]  ;;  %v37_v1 = vld [vmem:[#allocation2 + $0x8] sm:$0xff]  ;;  %vm42_vm0 = vcmask 596992   ;;  %s152_s1 = smov [#allocation7]  }
  0x26   :  { %v38_v2 = vld [vmem:[#allocation5] sm:$0xff]  ;;  %v39_v3 = vld [vmem:[#allocation5 + $0x8] sm:$0xff]  ;;  %s63_s4 = sshll.u32 %s152_s1, 4  ;;  %vm55_vm1 = vcmask 0   ;;  %s64_s4 = int_to_ptr.vmem [resolvable:$true] %s63_s4 }
  0x27   :  { %v40_v4 = vmul.f32 %v38_v2, %v36_v0  ;;  %v41_v5 = vmul.f32 %v39_v3, %v37_v1  ;;  %s122_s6 = scalar_lea.vmem %s64_s4, 16  ;;  %s126_s7 = scalar_lea.vmem %s64_s4, 32 }
  0x28   :  { %p123_p2 = scmp.ne.s32.totalorder %s64_s4, %s122_s6  ;;  %p127_p3 = scmp.lt.s32.totalorder %s64_s4, %s64_s4 }
  0x29   :  { %v43_v6 = vsel %vm42_vm0, %v41_v5, 0.0  ;;  %p128_p4 = scmp.lt.s32.totalorder %s126_s7, %s122_s6 }
  0x2a   :  { %v44_v7 = vadd.f32 %v43_v6, %v40_v4 }
  0x2b   :  { %p129_p5 = por %p128_p4, %p127_p3 }
  0x2c   :  { %45 = vadd.xlane.f32.xlu0 %v44_v7 }
  0x2d   :  { %p130_p6 = pnand %p129_p5, %p123_p2 }
  0xb9   :  { %v46_v8 = vpop.xlane.xlu0 %45 }
  0xba   :  { %v47_v9 = vrot.slane %v46_v8, 4 }
  0xbc   :  { %v48_v10 = vadd.f32 %v47_v9, %v46_v8 }
  0xbe   :  { %v49_v11 = vrot.slane %v48_v10, 2 }
  0xc0   :  { %v50_v12 = vadd.f32 %v49_v11, %v48_v10 }
  0xc2   :  { %v51_v13 = vrot.slane %v50_v12, 1 }
  0xc4   :  { %v52_v14 = vadd.f32 %v51_v13, %v50_v12 }
  0xc6   :  { %73 = vpush %v52_v14 }
  0xf7   :  { %s74_s5 = spop %73 }
  0xf8   :  { %v54_v15 = vstv %s74_s5 }
  0xf9   :  { %56 = vst.msk [vmem:[#allocation7] sm:$0x1] %vm55_vm1, %v54_v15 }
  0xfa   :  { %133 = shalt.err (!%p130_p6)
}
  0xfb   :  { %s134_s10 = scalar_lea.hbm %s206_s2, 16 }
  0xfc   :  { %p135_p7 = scmp.ne.s32.totalorder %s206_s2, %s134_s10  ;;  %p138_p8 = scmp.lt.u32.totalorder %s134_s10, %s206_s2 }
  0xfe   :  { %p140_p9 = pnand %p138_p8, %p135_p7 }
 0x100   :  { %143 = shalt.err (!%p140_p9)
}
 0x101   :  { %66 = dma.vmem_to_hbm [thread:$0]  %s64_s4, 16, %s206_s2, [#allocation4]  }
 0x102   :  { %148 = dma.done.wait [#allocation4], 16  }
 0x103   :  { %149 = vsyncadd [#allocation4], 4294967280 }
 0x104   :  { %70 = vsyncpa [#allocation3], 1 }
 0x105   :  { %71 = vsyncpa [#allocation6], 1 }
 0x106   :  { %72 = vsyncpa [#allocation4], 1 }

</bundles_post_ra>
